<compile_context>
chip_gen: v6e
topology: v6e:2x2x1
jax: 0.10.0
libtpu: 0.0.40
codegen_flags: <defaults>
</compile_context>

<pallas_src>
import functools

import jax
import jax.numpy as jnp
from jax import lax
from jax.experimental import pallas as pl
from jax.experimental.pallas import tpu as pltpu

BN_EPS = 1e-5


def _full_spec(shape):
    # single-program grid, block == full array
    return pl.BlockSpec(shape, lambda i: (0,) * len(shape))


def _bn_relu(h, gamma, beta):
    # training-mode BatchNorm1d over all (B*L) rows: batch stats, biased variance.
    mean = jnp.mean(h, axis=0, keepdims=True)
    var = jnp.mean((h - mean) ** 2, axis=0, keepdims=True)
    return jnp.maximum((h - mean) * lax.rsqrt(var + BN_EPS) * gamma + beta, 0.0)


def _upblock_kernel(x_ref, skip_ref, wup_ref, bup_ref,
                    w1_ref, g1_ref, be1_ref,
                    w2_ref, g2_ref, be2_ref,
                    out_ref, cat_ref, hpad_ref,
                    *, B, L, Ls, Lout, z_off, s_off):
    f32 = jnp.float32
    Chalf = wup_ref.shape[1] // 2
    Ccat = cat_ref.shape[-1]
    Cout = out_ref.shape[-1]
    mxu_dtype = w1_ref.dtype        # f32 default; bf16 for v6e/v7x production

    # --- ConvTranspose1d(k=2, s=2): both taps folded into ONE matmul.
    #     cols [:Chalf] = tap 0 (even output positions), [Chalf:] = tap 1 (odd).
    z2 = jnp.dot(x_ref[...], wup_ref[...], preferred_element_type=f32) + bup_ref[...]

    # even/odd interleave along the length axis; lane dim stays Chalf throughout.
    # TODO(synk): replace with two stride-2 sublane stores once strided *stores* are
    #             a guaranteed lowering at these shapes.
    z_even = z2[:, :Chalf].reshape(B * L, 1, Chalf)
    z_odd = z2[:, Chalf:].reshape(B * L, 1, Chalf)
    z3 = jnp.concatenate([z_even, z_odd], axis=1).reshape(B, 2 * L, Chalf)

    # --- unified zero-bordered concat scratch: lanes [0:Chalf]=up branch, [Chalf:]=skip.
    #     Zero ONLY the border rows; interior rows are fully overwritten right below
    #     (data writes come after the zeroing, so overlaps are safe).
    top = max(z_off, s_off)                       # rows [0, top) are pure padding
    bot = min(z_off + 2 * L, s_off + Ls)          # rows [bot, Lout+2) are pure padding
    cat_ref[:, :top, :] = jnp.zeros((B, top, Ccat), f32)
    cat_ref[:, bot:, :] = jnp.zeros((B, (Lout + 2) - bot, Ccat), f32)
    cat_ref[:, z_off:z_off + 2 * L, :Chalf] = z3
    cat_ref[:, s_off:s_off + Ls, Chalf:] = skip_ref[...]

    # --- k=3, pad=1 conv as 3 accumulated tap matmuls (no im2col lane concat).
    def conv3(src_ref, w_ref, c_in):
        acc = None
        for k in range(3):                        # static, fully unrolled
            tap = src_ref[:, k:k + Lout, :].reshape(B * Lout, c_in).astype(mxu_dtype)
            d = jnp.dot(tap, w_ref[k], preferred_element_type=f32)
            acc = d if acc is None else acc + d
        return acc

    # --- conv1 + BN + ReLU  (conv bias dropped: cancels in training-mode BN).
    h = _bn_relu(conv3(cat_ref, w1_ref, Ccat), g1_ref[...], be1_ref[...])

    # --- conv2 + BN + ReLU through a second zero-bordered scratch.
    hpad_ref[:, :1, :] = jnp.zeros((B, 1, Cout), f32)
    hpad_ref[:, Lout + 1:, :] = jnp.zeros((B, 1, Cout), f32)
    hpad_ref[:, 1:1 + Lout, :] = h.reshape(B, Lout, Cout)

    out_ref[...] = _bn_relu(conv3(hpad_ref, w2_ref, Cout), g2_ref[...], be2_ref[...])


def up_block_forward(x, skip, p, *, mxu_dtype=jnp.float32):
    """x: (B, Cin, L), skip: (B, Cskip, Ls) -- PyTorch NCL.  Returns (B, Cout, Lout)."""
    B, Cin, L = x.shape
    Chalf = Cin // 2
    Cskip = skip.shape[1]
    Cout = p["conv1_w"].shape[0]
    Ccat = Chalf + Cskip

    # --- length-matching pads (mirrors the torch F.pad logic) ---
    Lz, Ls = 2 * L, skip.shape[2]
    diff = Ls - Lz
    if diff > 0:
        z_pad_l, z_pad_r, s_pad_l, s_pad_r = diff // 2, diff - diff // 2, 0, 0
    elif diff < 0:
        z_pad_l, z_pad_r, s_pad_l, s_pad_r = 0, 0, (-diff) // 2, -diff + diff // 2
    else:
        z_pad_l = z_pad_r = s_pad_l = s_pad_r = 0
    Lout = Lz + z_pad_l + z_pad_r
    assert Ls + s_pad_l + s_pad_r == Lout, "padded lengths must match (torch.cat requirement)"

    f32 = jnp.float32
    # --- cheap layout glue on inputs / params; padding & concat happen IN the kernel ---
    x2d = jnp.transpose(x, (0, 2, 1)).reshape(B * L, Cin).astype(mxu_dtype)
    skip_cl = jnp.transpose(skip, (0, 2, 1)).astype(f32)              # (B, Ls, Cskip), NO pre-pad

    # ConvTranspose taps fused into a single (Cin, 2*Chalf) weight; bias duplicated.
    wup = jnp.transpose(p["up_w"], (0, 2, 1)).reshape(Cin, 2 * Chalf).astype(mxu_dtype)
    bup = jnp.tile(p["up_b"], 2).reshape(1, 2 * Chalf).astype(f32)

    # per-tap conv weights: (3, Cin_group, Cout); channel order matches torch.cat([up, skip]).
    w1 = jnp.transpose(p["conv1_w"], (2, 1, 0)).astype(mxu_dtype)     # (3, Ccat, Cout)
    w2 = jnp.transpose(p["conv2_w"], (2, 1, 0)).astype(mxu_dtype)     # (3, Cout, Cout)
    # conv1_b / conv2_b intentionally dropped: they cancel in training-mode BN.

    g1 = p["bn1_g"].reshape(1, Cout).astype(f32)
    be1 = p["bn1_b"].reshape(1, Cout).astype(f32)
    g2 = p["bn2_g"].reshape(1, Cout).astype(f32)
    be2 = p["bn2_b"].reshape(1, Cout).astype(f32)

    args = (x2d, skip_cl, wup, bup, w1, g1, be1, w2, g2, be2)
    kernel = functools.partial(_upblock_kernel, B=B, L=L, Ls=Ls, Lout=Lout,
                               z_off=1 + z_pad_l, s_off=1 + s_pad_l)

    out2d = pl.pallas_call(
        kernel,
        grid=(1,),
        in_specs=[_full_spec(a.shape) for a in args],
        out_specs=_full_spec((B * Lout, Cout)),
        out_shape=jax.ShapeDtypeStruct((B * Lout, Cout), f32),
        scratch_shapes=[pltpu.VMEM((B, Lout + 2, Ccat), f32),
                        pltpu.VMEM((B, Lout + 2, Cout), f32)],
        compiler_params=pltpu.CompilerParams(
            dimension_semantics=("arbitrary",),
            vmem_limit_bytes=32 * 1024 * 1024),
    )(*args)

    # NCL output.
    # TODO(synk): at production shapes transpose the (Lout, Cout) tile in-kernel and
    #             emit lane-dense NCL directly (removes this extra HBM pass and the
    #             masked Cout-lane stores); skipped at these tiny shapes for lowering
    #             safety.
    return jnp.transpose(out2d.reshape(B, Lout, Cout), (0, 2, 1))


# ---------------------------------------------------------------------------
# Pure-JAX reference (NCL layout, mirrors the PyTorch module) for validation
# ---------------------------------------------------------------------------
def _ref_forward(x, skip, p):
    B, Cin, L = x.shape
    Chalf = Cin // 2
    y0 = jnp.einsum('bil,io->bol', x, p["up_w"][:, :, 0])
    y1 = jnp.einsum('bil,io->bol', x, p["up_w"][:, :, 1])
    z = jnp.stack([y0, y1], axis=-1).reshape(B, Chalf, 2 * L) + p["up_b"][None, :, None]

    diff = skip.shape[2] - z.shape[2]
    if diff > 0:
        z = jnp.pad(z, ((0, 0), (0, 0), (diff // 2, diff - diff // 2)))
    elif diff < 0:
        skip = jnp.pad(skip, ((0, 0), (0, 0), (-diff // 2, -diff + diff // 2)))
    h = jnp.concatenate([z, skip], axis=1)

    def conv_bn_relu(h, w, b, g, beta):
        h = lax.conv_general_dilated(h, w, window_strides=(1,), padding=[(1, 1)],
                                     dimension_numbers=('NCH', 'OIH', 'NCH'))
        h = h + b[None, :, None]
        mean = jnp.mean(h, axis=(0, 2), keepdims=True)
        var = jnp.mean((h - mean) ** 2, axis=(0, 2), keepdims=True)
        h = (h - mean) / jnp.sqrt(var + BN_EPS)
        h = h * g[None, :, None] + beta[None, :, None]
        return jnp.maximum(h, 0.0)

    h = conv_bn_relu(h, p["conv1_w"], p["conv1_b"], p["bn1_g"], p["bn1_b"])
    h = conv_bn_relu(h, p["conv2_w"], p["conv2_b"], p["bn2_g"], p["bn2_b"])
    return h


if __name__ == "__main__":
    B, Cin, Cskip, Cout, L = 2, 8, 6, 8, 8
    Chalf = Cin // 2
    Ccat = Chalf + Cskip

    key = jax.random.PRNGKey(0)
    ks = jax.random.split(key, 14)
    params = {
        "up_w":    0.3 * jax.random.normal(ks[0], (Cin, Chalf, 2), jnp.float32),
        "up_b":    0.1 * jax.random.normal(ks[1], (Chalf,), jnp.float32),
        "conv1_w": 0.3 * jax.random.normal(ks[2], (Cout, Ccat, 3), jnp.float32),
        "conv1_b": 0.1 * jax.random.normal(ks[3], (Cout,), jnp.float32),
        "bn1_g":   1.0 + 0.1 * jax.random.normal(ks[4], (Cout,), jnp.float32),
        "bn1_b":   0.1 * jax.random.normal(ks[5], (Cout,), jnp.float32),
        "conv2_w": 0.3 * jax.random.normal(ks[6], (Cout, Cout, 3), jnp.float32),
        "conv2_b": 0.1 * jax.random.normal(ks[7], (Cout,), jnp.float32),
        "bn2_g":   1.0 + 0.1 * jax.random.normal(ks[8], (Cout,), jnp.float32),
        "bn2_b":   0.1 * jax.random.normal(ks[9], (Cout,), jnp.float32),
    }
    x = jax.random.normal(ks[10], (B, Cin, L), jnp.float32)           # (B, Cin, L)

    # three skip lengths: exact match, skip longer (up branch padded), skip shorter
    # (skip padded; even deficit -- odd deficits crash in torch.cat, mirrored by assert).
    for i, Ls in enumerate((2 * L, 2 * L + 3, 2 * L - 2)):
        skip = jax.random.normal(ks[11 + i], (B, Cskip, Ls), jnp.float32)
        out = jax.block_until_ready(up_block_forward(x, skip, params))
        ref = _ref_forward(x, skip, params)
        assert out.shape == ref.shape, (out.shape, ref.shape)
        err = float(jnp.max(jnp.abs(out - ref)))
        assert jnp.allclose(out, ref, atol=1e-4, rtol=1e-4), (Ls, err)

    print("KERNEL_OK")
</pallas_src>

<mosaic_0001>
module attributes {stable_mosaic.version = 11 : i64} {
  func.func @_upblock_kernel(%arg0: i32, %arg1: memref<16x8xf32, #tpu.memory_space<vmem>>, %arg2: memref<2x16x6xf32, #tpu.memory_space<vmem>>, %arg3: memref<8x8xf32, #tpu.memory_space<vmem>>, %arg4: memref<1x8xf32, #tpu.memory_space<vmem>>, %arg5: memref<3x10x8xf32, #tpu.memory_space<vmem>>, %arg6: memref<1x8xf32, #tpu.memory_space<vmem>>, %arg7: memref<1x8xf32, #tpu.memory_space<vmem>>, %arg8: memref<3x8x8xf32, #tpu.memory_space<vmem>>, %arg9: memref<1x8xf32, #tpu.memory_space<vmem>>, %arg10: memref<1x8xf32, #tpu.memory_space<vmem>>, %arg11: memref<32x8xf32, #tpu.memory_space<vmem>>, %arg12: memref<2x18x10xf32, #tpu.memory_space<vmem>>, %arg13: memref<2x18x8xf32, #tpu.memory_space<vmem>>) attributes {dimension_semantics = [#tpu.dimension_semantics<arbitrary>], iteration_bounds = array<i64: 1>, scalar_prefetch = 0 : i64, scratch_operands = 2 : i64, tpu.core_type = #tpu.core_type<tc>, window_params = [{pipeline_mode = #tpu.pipeline_mode<synchronous>, transform_indices = @transform_0, window_bounds = array<i64: 16, 8>}, {pipeline_mode = #tpu.pipeline_mode<synchronous>, transform_indices = @transform_1, window_bounds = array<i64: 2, 16, 6>}, {pipeline_mode = #tpu.pipeline_mode<synchronous>, transform_indices = @transform_2, window_bounds = array<i64: 8, 8>}, {pipeline_mode = #tpu.pipeline_mode<synchronous>, transform_indices = @transform_3, window_bounds = array<i64: 1, 8>}, {pipeline_mode = #tpu.pipeline_mode<synchronous>, transform_indices = @transform_4, window_bounds = array<i64: 3, 10, 8>}, {pipeline_mode = #tpu.pipeline_mode<synchronous>, transform_indices = @transform_5, window_bounds = array<i64: 1, 8>}, {pipeline_mode = #tpu.pipeline_mode<synchronous>, transform_indices = @transform_6, window_bounds = array<i64: 1, 8>}, {pipeline_mode = #tpu.pipeline_mode<synchronous>, transform_indices = @transform_7, window_bounds = array<i64: 3, 8, 8>}, {pipeline_mode = #tpu.pipeline_mode<synchronous>, transform_indices = @transform_8, window_bounds = array<i64: 1, 8>}, {pipeline_mode = #tpu.pipeline_mode<synchronous>, transform_indices = @transform_9, window_bounds = array<i64: 1, 8>}, {pipeline_mode = #tpu.pipeline_mode<synchronous>, transform_indices = @transform_10, window_bounds = array<i64: 32, 8>}]} {
    %c0 = arith.constant 0 : index
    %c0_0 = arith.constant 0 : index
    %0 = vector.load %arg1[%c0, %c0_0] : memref<16x8xf32, #tpu.memory_space<vmem>>, vector<16x8xf32>
    %c0_1 = arith.constant 0 : index
    %c0_2 = arith.constant 0 : index
    %1 = vector.load %arg3[%c0_1, %c0_2] : memref<8x8xf32, #tpu.memory_space<vmem>>, vector<8x8xf32>
    %cst = arith.constant dense<0.000000e+00> : vector<16x8xf32>
    %2 = tpu.matmul %0, %1, %cst {dimension_numbers = #tpu.dot_dimension_numbers<[1], [0], [0], [1], [0, 0, 1, 1], [], []>} : vector<16x8xf32>, vector<8x8xf32>, vector<16x8xf32> -> vector<16x8xf32>
    %c0_3 = arith.constant 0 : index
    %c0_4 = arith.constant 0 : index
    %3 = vector.load %arg4[%c0_3, %c0_4] : memref<1x8xf32, #tpu.memory_space<vmem>>, vector<1x8xf32>
    %4 = vector.broadcast %3 : vector<1x8xf32> to vector<16x8xf32>
    %5 = arith.addf %2, %4 : vector<16x8xf32>
    %6 = vector.extract_strided_slice %5 {offsets = [0, 0], sizes = [16, 4], strides = [1, 1]} : vector<16x8xf32> to vector<16x4xf32>
    %7 = vector.shape_cast %6 : vector<16x4xf32> to vector<16x1x4xf32>
    %8 = vector.extract_strided_slice %5 {offsets = [0, 4], sizes = [16, 4], strides = [1, 1]} : vector<16x8xf32> to vector<16x4xf32>
    %9 = vector.shape_cast %8 : vector<16x4xf32> to vector<16x1x4xf32>
    %10 = tpu.concatenate %7, %9 in 1 : vector<16x1x4xf32>, vector<16x1x4xf32> -> vector<16x2x4xf32>
    %11 = vector.shape_cast %10 : vector<16x2x4xf32> to vector<2x16x4xf32>
    %cst_5 = arith.constant 0.000000e+00 : f32
    %12 = vector.broadcast %cst_5 : f32 to vector<2x1x10xf32>
    %c0_6 = arith.constant 0 : index
    %c0_7 = arith.constant 0 : index
    %c0_8 = arith.constant 0 : index
    %13 = vector.load %arg12[%c0_6, %c0_7, %c0_8] : memref<2x18x10xf32, #tpu.memory_space<vmem>>, vector<2x1x10xf32>
    tpu.vector_store %arg12[%c0_6, %c0_7, %c0_8], %12 {strides = array<i32>} : memref<2x18x10xf32, #tpu.memory_space<vmem>>, vector<2x1x10xf32>,
    %cst_9 = arith.constant 0.000000e+00 : f32
    %14 = vector.broadcast %cst_9 : f32 to vector<2x1x10xf32>
    %c0_10 = arith.constant 0 : index
    %c17 = arith.constant 17 : index
    %c0_11 = arith.constant 0 : index
    %15 = vector.load %arg12[%c0_10, %c17, %c0_11] : memref<2x18x10xf32, #tpu.memory_space<vmem>>, vector<2x1x10xf32>
    tpu.vector_store %arg12[%c0_10, %c17, %c0_11], %14 {strides = array<i32>} : memref<2x18x10xf32, #tpu.memory_space<vmem>>, vector<2x1x10xf32>,
    %c0_12 = arith.constant 0 : index
    %c1 = arith.constant 1 : index
    %c0_13 = arith.constant 0 : index
    %16 = vector.load %arg12[%c0_12, %c1, %c0_13] : memref<2x18x10xf32, #tpu.memory_space<vmem>>, vector<2x16x4xf32>
    tpu.vector_store %arg12[%c0_12, %c1, %c0_13], %11 {strides = array<i32>} : memref<2x18x10xf32, #tpu.memory_space<vmem>>, vector<2x16x4xf32>,
    %c0_14 = arith.constant 0 : index
    %c0_15 = arith.constant 0 : index
    %c0_16 = arith.constant 0 : index
    %17 = vector.load %arg2[%c0_14, %c0_15, %c0_16] : memref<2x16x6xf32, #tpu.memory_space<vmem>>, vector<2x16x6xf32>
    %c0_17 = arith.constant 0 : index
    %c1_18 = arith.constant 1 : index
    %c4 = arith.constant 4 : index
    %18 = vector.load %arg12[%c0_17, %c1_18, %c4] : memref<2x18x10xf32, #tpu.memory_space<vmem>>, vector<2x16x6xf32>
    tpu.vector_store %arg12[%c0_17, %c1_18, %c4], %17 {strides = array<i32>} : memref<2x18x10xf32, #tpu.memory_space<vmem>>, vector<2x16x6xf32>,
    %c0_19 = arith.constant 0 : index
    %c0_20 = arith.constant 0 : index
    %c0_21 = arith.constant 0 : index
    %19 = vector.load %arg12[%c0_19, %c0_20, %c0_21] : memref<2x18x10xf32, #tpu.memory_space<vmem>>, vector<2x16x10xf32>
    %20 = vector.shape_cast %19 : vector<2x16x10xf32> to vector<32x10xf32>
    %c0_22 = arith.constant 0 : index
    %c0_23 = arith.constant 0 : index
    %c0_24 = arith.constant 0 : index
    %21 = vector.load %arg5[%c0_22, %c0_23, %c0_24] : memref<3x10x8xf32, #tpu.memory_space<vmem>>, vector<1x10x8xf32>
    %22 = vector.shape_cast %21 : vector<1x10x8xf32> to vector<10x8xf32>
    %cst_25 = arith.constant dense<0.000000e+00> : vector<32x8xf32>
    %23 = tpu.matmul %20, %22, %cst_25 {dimension_numbers = #tpu.dot_dimension_numbers<[1], [0], [0], [1], [0, 0, 1, 1], [], []>} : vector<32x10xf32>, vector<10x8xf32>, vector<32x8xf32> -> vector<32x8xf32>
    %c0_26 = arith.constant 0 : index
    %c1_27 = arith.constant 1 : index
    %c0_28 = arith.constant 0 : index
    %24 = vector.load %arg12[%c0_26, %c1_27, %c0_28] : memref<2x18x10xf32, #tpu.memory_space<vmem>>, vector<2x16x10xf32>
    %25 = vector.shape_cast %24 : vector<2x16x10xf32> to vector<32x10xf32>
    %c1_29 = arith.constant 1 : index
    %c0_30 = arith.constant 0 : index
    %c0_31 = arith.constant 0 : index
    %26 = vector.load %arg5[%c1_29, %c0_30, %c0_31] : memref<3x10x8xf32, #tpu.memory_space<vmem>>, vector<1x10x8xf32>
    %27 = vector.shape_cast %26 : vector<1x10x8xf32> to vector<10x8xf32>
    %cst_32 = arith.constant dense<0.000000e+00> : vector<32x8xf32>
    %28 = tpu.matmul %25, %27, %cst_32 {dimension_numbers = #tpu.dot_dimension_numbers<[1], [0], [0], [1], [0, 0, 1, 1], [], []>} : vector<32x10xf32>, vector<10x8xf32>, vector<32x8xf32> -> vector<32x8xf32>
    %29 = arith.addf %23, %28 : vector<32x8xf32>
    %c0_33 = arith.constant 0 : index
    %c2 = arith.constant 2 : index
    %c0_34 = arith.constant 0 : index
    %30 = vector.load %arg12[%c0_33, %c2, %c0_34] : memref<2x18x10xf32, #tpu.memory_space<vmem>>, vector<2x16x10xf32>
    %31 = vector.shape_cast %30 : vector<2x16x10xf32> to vector<32x10xf32>
    %c2_35 = arith.constant 2 : index
    %c0_36 = arith.constant 0 : index
    %c0_37 = arith.constant 0 : index
    %32 = vector.load %arg5[%c2_35, %c0_36, %c0_37] : memref<3x10x8xf32, #tpu.memory_space<vmem>>, vector<1x10x8xf32>
    %33 = vector.shape_cast %32 : vector<1x10x8xf32> to vector<10x8xf32>
    %cst_38 = arith.constant dense<0.000000e+00> : vector<32x8xf32>
    %34 = tpu.matmul %31, %33, %cst_38 {dimension_numbers = #tpu.dot_dimension_numbers<[1], [0], [0], [1], [0, 0, 1, 1], [], []>} : vector<32x10xf32>, vector<10x8xf32>, vector<32x8xf32> -> vector<32x8xf32>
    %35 = arith.addf %29, %34 : vector<32x8xf32>
    %c0_39 = arith.constant 0 : index
    %c0_40 = arith.constant 0 : index
    %36 = vector.load %arg6[%c0_39, %c0_40] : memref<1x8xf32, #tpu.memory_space<vmem>>, vector<1x8xf32>
    %c0_41 = arith.constant 0 : index
    %c0_42 = arith.constant 0 : index
    %37 = vector.load %arg7[%c0_41, %c0_42] : memref<1x8xf32, #tpu.memory_space<vmem>>, vector<1x8xf32>
    %cst_43 = arith.constant dense<0.000000e+00> : vector<8xf32>
    %38 = vector.multi_reduction <add>, %35, %cst_43 [0] : vector<32x8xf32> to vector<8xf32>
    %39 = vector.shape_cast %38 : vector<8xf32> to vector<1x8xf32>
    %cst_44 = arith.constant 3.200000e+01 : f32
    %40 = vector.broadcast %cst_44 : f32 to vector<1x8xf32>
    %41 = arith.divf %39, %40 : vector<1x8xf32>
    %42 = vector.broadcast %41 : vector<1x8xf32> to vector<32x8xf32>
    %43 = arith.subf %35, %42 : vector<32x8xf32>
    %44 = arith.mulf %43, %43 : vector<32x8xf32>
    %cst_45 = arith.constant dense<0.000000e+00> : vector<8xf32>
    %45 = vector.multi_reduction <add>, %44, %cst_45 [0] : vector<32x8xf32> to vector<8xf32>
    %46 = vector.shape_cast %45 : vector<8xf32> to vector<1x8xf32>
    %cst_46 = arith.constant 3.200000e+01 : f32
    %47 = vector.broadcast %cst_46 : f32 to vector<1x8xf32>
    %48 = arith.divf %46, %47 : vector<1x8xf32>
    %49 = vector.broadcast %41 : vector<1x8xf32> to vector<32x8xf32>
    %50 = arith.subf %35, %49 : vector<32x8xf32>
    %cst_47 = arith.constant 9.99999974E-6 : f32
    %51 = vector.broadcast %cst_47 : f32 to vector<1x8xf32>
    %52 = arith.addf %48, %51 : vector<1x8xf32>
    %53 = math.rsqrt %52 : vector<1x8xf32>
    %54 = vector.broadcast %53 : vector<1x8xf32> to vector<32x8xf32>
    %55 = arith.mulf %50, %54 : vector<32x8xf32>
    %56 = vector.broadcast %36 : vector<1x8xf32> to vector<32x8xf32>
    %57 = arith.mulf %55, %56 : vector<32x8xf32>
    %58 = vector.broadcast %37 : vector<1x8xf32> to vector<32x8xf32>
    %59 = arith.addf %57, %58 : vector<32x8xf32>
    %cst_48 = arith.constant 0.000000e+00 : f32
    %60 = vector.broadcast %cst_48 : f32 to vector<32x8xf32>
    %61 = arith.maximumf %59, %60 : vector<32x8xf32>
    %cst_49 = arith.constant 0.000000e+00 : f32
    %62 = vector.broadcast %cst_49 : f32 to vector<2x1x8xf32>
    %c0_50 = arith.constant 0 : index
    %c0_51 = arith.constant 0 : index
    %c0_52 = arith.constant 0 : index
    %63 = vector.load %arg13[%c0_50, %c0_51, %c0_52] : memref<2x18x8xf32, #tpu.memory_space<vmem>>, vector<2x1x8xf32>
    tpu.vector_store %arg13[%c0_50, %c0_51, %c0_52], %62 {strides = array<i32>} : memref<2x18x8xf32, #tpu.memory_space<vmem>>, vector<2x1x8xf32>,
    %cst_53 = arith.constant 0.000000e+00 : f32
    %64 = vector.broadcast %cst_53 : f32 to vector<2x1x8xf32>
    %c0_54 = arith.constant 0 : index
    %c17_55 = arith.constant 17 : index
    %c0_56 = arith.constant 0 : index
    %65 = vector.load %arg13[%c0_54, %c17_55, %c0_56] : memref<2x18x8xf32, #tpu.memory_space<vmem>>, vector<2x1x8xf32>
    tpu.vector_store %arg13[%c0_54, %c17_55, %c0_56], %64 {strides = array<i32>} : memref<2x18x8xf32, #tpu.memory_space<vmem>>, vector<2x1x8xf32>,
    %66 = vector.shape_cast %61 : vector<32x8xf32> to vector<2x16x8xf32>
    %c0_57 = arith.constant 0 : index
    %c1_58 = arith.constant 1 : index
    %c0_59 = arith.constant 0 : index
    %67 = vector.load %arg13[%c0_57, %c1_58, %c0_59] : memref<2x18x8xf32, #tpu.memory_space<vmem>>, vector<2x16x8xf32>
    tpu.vector_store %arg13[%c0_57, %c1_58, %c0_59], %66 {strides = array<i32>} : memref<2x18x8xf32, #tpu.memory_space<vmem>>, vector<2x16x8xf32>,
    %c0_60 = arith.constant 0 : index
    %c0_61 = arith.constant 0 : index
    %c0_62 = arith.constant 0 : index
    %68 = vector.load %arg13[%c0_60, %c0_61, %c0_62] : memref<2x18x8xf32, #tpu.memory_space<vmem>>, vector<2x16x8xf32>
    %69 = vector.shape_cast %68 : vector<2x16x8xf32> to vector<32x8xf32>
    %c0_63 = arith.constant 0 : index
    %c0_64 = arith.constant 0 : index
    %c0_65 = arith.constant 0 : index
    %70 = vector.load %arg8[%c0_63, %c0_64, %c0_65] : memref<3x8x8xf32, #tpu.memory_space<vmem>>, vector<1x8x8xf32>
    %71 = vector.shape_cast %70 : vector<1x8x8xf32> to vector<8x8xf32>
    %cst_66 = arith.constant dense<0.000000e+00> : vector<32x8xf32>
    %72 = tpu.matmul %69, %71, %cst_66 {dimension_numbers = #tpu.dot_dimension_numbers<[1], [0], [0], [1], [0, 0, 1, 1], [], []>} : vector<32x8xf32>, vector<8x8xf32>, vector<32x8xf32> -> vector<32x8xf32>
    %c0_67 = arith.constant 0 : index
    %c1_68 = arith.constant 1 : index
    %c0_69 = arith.constant 0 : index
    %73 = vector.load %arg13[%c0_67, %c1_68, %c0_69] : memref<2x18x8xf32, #tpu.memory_space<vmem>>, vector<2x16x8xf32>
    %74 = vector.shape_cast %73 : vector<2x16x8xf32> to vector<32x8xf32>
    %c1_70 = arith.constant 1 : index
    %c0_71 = arith.constant 0 : index
    %c0_72 = arith.constant 0 : index
    %75 = vector.load %arg8[%c1_70, %c0_71, %c0_72] : memref<3x8x8xf32, #tpu.memory_space<vmem>>, vector<1x8x8xf32>
    %76 = vector.shape_cast %75 : vector<1x8x8xf32> to vector<8x8xf32>
    %cst_73 = arith.constant dense<0.000000e+00> : vector<32x8xf32>
    %77 = tpu.matmul %74, %76, %cst_73 {dimension_numbers = #tpu.dot_dimension_numbers<[1], [0], [0], [1], [0, 0, 1, 1], [], []>} : vector<32x8xf32>, vector<8x8xf32>, vector<32x8xf32> -> vector<32x8xf32>
    %78 = arith.addf %72, %77 : vector<32x8xf32>
    %c0_74 = arith.constant 0 : index
    %c2_75 = arith.constant 2 : index
    %c0_76 = arith.constant 0 : index
    %79 = vector.load %arg13[%c0_74, %c2_75, %c0_76] : memref<2x18x8xf32, #tpu.memory_space<vmem>>, vector<2x16x8xf32>
    %80 = vector.shape_cast %79 : vector<2x16x8xf32> to vector<32x8xf32>
    %c2_77 = arith.constant 2 : index
    %c0_78 = arith.constant 0 : index
    %c0_79 = arith.constant 0 : index
    %81 = vector.load %arg8[%c2_77, %c0_78, %c0_79] : memref<3x8x8xf32, #tpu.memory_space<vmem>>, vector<1x8x8xf32>
    %82 = vector.shape_cast %81 : vector<1x8x8xf32> to vector<8x8xf32>
    %cst_80 = arith.constant dense<0.000000e+00> : vector<32x8xf32>
    %83 = tpu.matmul %80, %82, %cst_80 {dimension_numbers = #tpu.dot_dimension_numbers<[1], [0], [0], [1], [0, 0, 1, 1], [], []>} : vector<32x8xf32>, vector<8x8xf32>, vector<32x8xf32> -> vector<32x8xf32>
    %84 = arith.addf %78, %83 : vector<32x8xf32>
    %c0_81 = arith.constant 0 : index
    %c0_82 = arith.constant 0 : index
    %85 = vector.load %arg9[%c0_81, %c0_82] : memref<1x8xf32, #tpu.memory_space<vmem>>, vector<1x8xf32>
    %c0_83 = arith.constant 0 : index
    %c0_84 = arith.constant 0 : index
    %86 = vector.load %arg10[%c0_83, %c0_84] : memref<1x8xf32, #tpu.memory_space<vmem>>, vector<1x8xf32>
    %cst_85 = arith.constant dense<0.000000e+00> : vector<8xf32>
    %87 = vector.multi_reduction <add>, %84, %cst_85 [0] : vector<32x8xf32> to vector<8xf32>
    %88 = vector.shape_cast %87 : vector<8xf32> to vector<1x8xf32>
    %cst_86 = arith.constant 3.200000e+01 : f32
    %89 = vector.broadcast %cst_86 : f32 to vector<1x8xf32>
    %90 = arith.divf %88, %89 : vector<1x8xf32>
    %91 = vector.broadcast %90 : vector<1x8xf32> to vector<32x8xf32>
    %92 = arith.subf %84, %91 : vector<32x8xf32>
    %93 = arith.mulf %92, %92 : vector<32x8xf32>
    %cst_87 = arith.constant dense<0.000000e+00> : vector<8xf32>
    %94 = vector.multi_reduction <add>, %93, %cst_87 [0] : vector<32x8xf32> to vector<8xf32>
    %95 = vector.shape_cast %94 : vector<8xf32> to vector<1x8xf32>
    %cst_88 = arith.constant 3.200000e+01 : f32
    %96 = vector.broadcast %cst_88 : f32 to vector<1x8xf32>
    %97 = arith.divf %95, %96 : vector<1x8xf32>
    %98 = vector.broadcast %90 : vector<1x8xf32> to vector<32x8xf32>
    %99 = arith.subf %84, %98 : vector<32x8xf32>
    %cst_89 = arith.constant 9.99999974E-6 : f32
    %100 = vector.broadcast %cst_89 : f32 to vector<1x8xf32>
    %101 = arith.addf %97, %100 : vector<1x8xf32>
    %102 = math.rsqrt %101 : vector<1x8xf32>
    %103 = vector.broadcast %102 : vector<1x8xf32> to vector<32x8xf32>
    %104 = arith.mulf %99, %103 : vector<32x8xf32>
    %105 = vector.broadcast %85 : vector<1x8xf32> to vector<32x8xf32>
    %106 = arith.mulf %104, %105 : vector<32x8xf32>
    %107 = vector.broadcast %86 : vector<1x8xf32> to vector<32x8xf32>
    %108 = arith.addf %106, %107 : vector<32x8xf32>
    %cst_90 = arith.constant 0.000000e+00 : f32
    %109 = vector.broadcast %cst_90 : f32 to vector<32x8xf32>
    %110 = arith.maximumf %108, %109 : vector<32x8xf32>
    %c0_91 = arith.constant 0 : index
    %c0_92 = arith.constant 0 : index
    %111 = vector.load %arg11[%c0_91, %c0_92] : memref<32x8xf32, #tpu.memory_space<vmem>>, vector<32x8xf32>
    tpu.vector_store %arg11[%c0_91, %c0_92], %110 {strides = array<i32>} : memref<32x8xf32, #tpu.memory_space<vmem>>, vector<32x8xf32>,
    return
  }
  func.func @transform_0(%arg0: i32) -> (i32, i32) {
    %c0_i32 = arith.constant 0 : i32
    %c0_i32_0 = arith.constant 0 : i32
    %c0_i32_1 = arith.constant 0 : i32
    return %c0_i32, %c0_i32_0 : i32, i32
  }
  func.func @transform_1(%arg0: i32) -> (i32, i32, i32) {
    %c0_i32 = arith.constant 0 : i32
    %c0_i32_0 = arith.constant 0 : i32
    %c0_i32_1 = arith.constant 0 : i32
    %c0_i32_2 = arith.constant 0 : i32
    return %c0_i32, %c0_i32_0, %c0_i32_1 : i32, i32, i32
  }
  func.func @transform_2(%arg0: i32) -> (i32, i32) {
    %c0_i32 = arith.constant 0 : i32
    %c0_i32_0 = arith.constant 0 : i32
    %c0_i32_1 = arith.constant 0 : i32
    return %c0_i32, %c0_i32_0 : i32, i32
  }
  func.func @transform_3(%arg0: i32) -> (i32, i32) {
    %c0_i32 = arith.constant 0 : i32
    %c0_i32_0 = arith.constant 0 : i32
    %c0_i32_1 = arith.constant 0 : i32
    return %c0_i32, %c0_i32_0 : i32, i32
  }
  func.func @transform_4(%arg0: i32) -> (i32, i32, i32) {
    %c0_i32 = arith.constant 0 : i32
    %c0_i32_0 = arith.constant 0 : i32
    %c0_i32_1 = arith.constant 0 : i32
    %c0_i32_2 = arith.constant 0 : i32
    return %c0_i32, %c0_i32_0, %c0_i32_1 : i32, i32, i32
  }
  func.func @transform_5(%arg0: i32) -> (i32, i32) {
    %c0_i32 = arith.constant 0 : i32
    %c0_i32_0 = arith.constant 0 : i32
    %c0_i32_1 = arith.constant 0 : i32
    return %c0_i32, %c0_i32_0 : i32, i32
  }
  func.func @transform_6(%arg0: i32) -> (i32, i32) {
    %c0_i32 = arith.constant 0 : i32
    %c0_i32_0 = arith.constant 0 : i32
    %c0_i32_1 = arith.constant 0 : i32
    return %c0_i32, %c0_i32_0 : i32, i32
  }
  func.func @transform_7(%arg0: i32) -> (i32, i32, i32) {
    %c0_i32 = arith.constant 0 : i32
    %c0_i32_0 = arith.constant 0 : i32
    %c0_i32_1 = arith.constant 0 : i32
    %c0_i32_2 = arith.constant 0 : i32
    return %c0_i32, %c0_i32_0, %c0_i32_1 : i32, i32, i32
  }
  func.func @transform_8(%arg0: i32) -> (i32, i32) {
    %c0_i32 = arith.constant 0 : i32
    %c0_i32_0 = arith.constant 0 : i32
    %c0_i32_1 = arith.constant 0 : i32
    return %c0_i32, %c0_i32_0 : i32, i32
  }
  func.func @transform_9(%arg0: i32) -> (i32, i32) {
    %c0_i32 = arith.constant 0 : i32
    %c0_i32_0 = arith.constant 0 : i32
    %c0_i32_1 = arith.constant 0 : i32
    return %c0_i32, %c0_i32_0 : i32, i32
  }
  func.func @transform_10(%arg0: i32) -> (i32, i32) {
    %c0_i32 = arith.constant 0 : i32
    %c0_i32_0 = arith.constant 0 : i32
    %c0_i32_1 = arith.constant 0 : i32
    return %c0_i32, %c0_i32_0 : i32, i32
  }
}

</mosaic_0001>

<bundles_post_ra>
// kernel: tpu_custom_call.1
= control target key start
LH: loop header
LB: loop body
LE: loop exit
PB: predicated region body
PF: predicated region fallthrough
CT: control target
= control target key end

     0   :  { %vm45_vm0 = vcmask 64512   ;;  %v1431_v3 = vmov 1966171168   ;;  %v133_v5 = vlaneseq  ;;  %vm521_vm1 = vcmask 1041408   ;;  %s1434_s11 = smov 4   ;;  %s1781_s2 = inlined_call_operand.vmem [shape: f32[8,8], index: 2, kind: input, shape index: {}]   ;;  %s1782_s0 = inlined_call_operand.vmem [shape: f32[16,8], index: 0, kind: input, shape index: {}]   ;;  %s1783_s3 = inlined_call_operand.vmem [shape: f32[1,8], index: 3, kind: input, shape index: {}]   ;;  %s1784_s4 = inlined_call_operand.vmem [shape: f32[3,10,8], index: 4, kind: input, shape index: {}]   ;;  %s1785_s1 = inlined_call_operand.vmem [shape: f32[2,16,6], index: 1, kind: input, shape index: {}]   ;;  %s1786_s7 = inlined_call_operand.vmem [shape: f32[3,8,8], index: 7, kind: input, shape index: {}]   ;;  %s1787_s5 = inlined_call_operand.vmem [shape: f32[1,8], index: 5, kind: input, shape index: {}]   ;;  %s1788_s6 = inlined_call_operand.vmem [shape: f32[1,8], index: 6, kind: input, shape index: {}]   ;;  %s1789_s8 = inlined_call_operand.vmem [shape: f32[1,8], index: 8, kind: input, shape index: {}]   ;;  %s1790_s9 = inlined_call_operand.vmem [shape: f32[1,8], index: 9, kind: input, shape index: {}]   ;;  %s1791_s10 = inlined_call_operand.vmem [shape: f32[32,8], index: 10, kind: output, shape index: {}]  }
   0x1   :  { %v37_v0 = vld [vmem:[%s1781_s2] sm:$0xff]  ;;  %v36_v2 = vld [vmem:[%s1782_s0 + $0x8] sm:$0xff]  ;;  %v131_v4 = vunpack.c.l.s4 %v1431_v3  ;;  %vm372_vm2 = vcmask 73728   ;;  %v1291_v53 = vld [vmem:[%s1784_s4 + $0x18] sm:$0x3]  ;;  %v1433_v54 = vmov 0.0  }
   0x2   :  { %v35_v1 = vld [vmem:[%s1782_s0] sm:$0xff]  ;;  %1363 = vmatprep.subr.mxu0 %v37_v0  ;;  %v1502_v7 = vshrl.u32 %v133_v5, 7  ;;  %s1432_s0 = smov 124   ;;  %373 = vst.msk [vmem:[#allocation2] sm:$0x1] %vm372_vm2, %v1433_v54  ;;  %1368 = vmatprep.subr.msk.mxu1 %vm521_vm1, %v1291_v53  ;;  %v1290_v59 = vld [vmem:[%s1784_s4 + $0x10] sm:$0xff] }
   0x3   :  { %1365 = vmatprep.mubr.msk.f32.mxu0 %vm45_vm0, %v35_v1  ;;  %1364 = vmatpush3.msra.mxu0 %v37_v0  ;;  %v132_v6 = vunpack.c.0.s8 %v131_v4  ;;  %v1287_v8 = vld [vmem:[%s1783_s3] ss:$0 sm:$0xff]  ;;  %374 = vst.msk [vmem:[#allocation2 + $0x18] sm:$0x1] %vm372_vm2, %v1433_v54  ;;  %375 = vst.msk [vmem:[#allocation2 + $0x11] sm:$0x1] %vm372_vm2, %v1433_v54 }
   0x4   :  { %1366 = vmatmul.mubr.msk.f32.vlgmr.msra.gmra.mxu0 %vm45_vm0, %v36_v2  ;;  %v1509_v14 = vsub.s32 0, %v1502_v7  ;;  %376 = vst.msk [vmem:[#allocation2 + $0x29] sm:$0x1] %vm372_vm2, %v1433_v54  ;;  %1369 = vmatpush3.msk.msra.mxu1 %vm521_vm1, %v1291_v53  ;;  %v500_v58 = vld [vmem:[%s1784_s4 + $0x8] sm:$0x3]  ;;  %v499_v60 = vld [vmem:[%s1784_s4] sm:$0xff] }
   0x5   :  { %v135_v9 = vsub.s32 %v132_v6, %v1502_v7  ;;  %1378 = vmatprep.subr.msk.mxu0 %vm521_vm1, %v500_v58  ;;  %v1625_v61 = vld [vmem:[%s1784_s4 + $0x28] sm:$0x3]  ;;  %1370 = vmatprep.subr.mxu1 %v1290_v59  ;;  %v470_v63 = vld [vmem:[%s1785_s1] sm:$0xff]  ;;  %v472_v1 = vld [vmem:[%s1785_s1 + $0x10] sm:$0xff]  ;;  %v1435_v4 = vmov 1983009808  }
   0x6   :  { %1379 = vmatpush3.msk.msra.mxu0 %vm521_vm1, %v500_v58  ;;  %1371 = vmatpush3.msra.mxu1 %v1290_v59  ;;  %v471_v0 = vld [vmem:[%s1785_s1 + $0x8] sm:$0xff]  ;;  %v473_v2 = vld [vmem:[%s1785_s1 + $0x18] sm:$0xff]  ;;  %v396_v5 = vunpack.c.l.s4 %v1435_v4  ;;  %vm355_vm3 = vcmask 1040384   ;;  %vm465_vm4 = vcmask 31744   ;;  %vm490_vm5 = vcmask 80928  }
   0x7   :  { %1380 = vmatprep.subr.mxu0 %v499_v60  ;;  %1388 = vmatprep.subr.msk.mxu1 %vm521_vm1, %v1625_v61  ;;  %vm508_vm6 = vcmask 80896   ;;  %vm890_vm7 = vcmask 57344  }
   0x8   :  { %1381 = vmatpush3.msra.mxu0 %v499_v60  ;;  %891 = vst.msk [vmem:[#allocation3] sm:$0x1] %vm890_vm7, %v1433_v54  ;;  %892 = vst.msk [vmem:[#allocation3 + $0x18] sm:$0x1] %vm890_vm7, %v1433_v54 }
   0x9   :  { %893 = vst.msk [vmem:[#allocation3 + $0x11] sm:$0x1] %vm890_vm7, %v1433_v54  ;;  %894 = vst.msk [vmem:[#allocation3 + $0x29] sm:$0x1] %vm890_vm7, %v1433_v54 }
  0xc4   :  { %v1367_v10 = vpop.f32.mrf.mxu0 }
  0xc5   :  { %v124_v11 = vadd.f32 %v1367_v10, %v1287_v8 }
  0xc6   :  { %v118_v12 = vpop.f32.mrf.mxu0 }
  0xc7   :  { %v185_v13 = vrot.slane %v124_v11, %v135_v9  ;;  %v119_v15 = vadd.f32 %v1287_v8, %v118_v12  ;;  %v178_v18 = vcombine.high %v124_v11, %v124_v11 }
  0xc9   :  { %v193_v16 = vcombine.high %v185_v13, %v185_v13  ;;  %v1511_v17 = vrot.slane %v185_v13, %v135_v9  ;;  %v136_v19 = vrot.slane %v119_v15, %v135_v9  ;;  %v192_v23 = vrot.slane %v178_v18, %v135_v9 }
  0xca   :  { %v129_v28 = vcombine.high %v119_v15, %v119_v15 }
  0xcb   :  { %v278_v20 = vrot.slane %v1511_v17, %v1509_v14  ;;  %v1515_v21 = vrot.slane %v136_v19, %v135_v9  ;;  %v1517_v22 = vrot.slane %v193_v16, %v135_v9  ;;  %v1530_v27 = vcombine.high %v1511_v17, %v1511_v17 }
  0xcc   :  { %v194_v29 = vcombine.high %v192_v23, %v192_v23  ;;  %v144_v30 = vcombine.high %v136_v19, %v136_v19  ;;  %v1540_v33 = vrot.slane %v192_v23, %v135_v9  ;;  %v143_v35 = vrot.slane %v129_v28, %v135_v9 }
  0xcd   :  { %323 = vrot.lane.b32.xlu0 %v278_v20, %s1432_s0  ;;  %v282_v24 = vrot.slane %v1517_v22, %v1509_v14  ;;  %v1524_v25 = vcombine.high %v1515_v21, %v1515_v21  ;;  %v246_v26 = vrot.slane %v1515_v21, %v1509_v14  ;;  %v1538_v32 = vcombine.high %v1517_v22, %v1517_v22 }
  0xce   :  { %v286_v34 = vrot.slane %v1530_v27, %v1509_v14  ;;  %v1546_v36 = vrot.slane %v144_v30, %v135_v9  ;;  %v1550_v38 = vrot.slane %v194_v29, %v135_v9  ;;  %v294_v39 = vrot.slane %v1540_v33, %v1509_v14 }
  0xcf   :  { %325 = vrot.lane.b32.xlu1 %v282_v24, %s1432_s0  ;;  %v254_v31 = vrot.slane %v1524_v25, %v1509_v14  ;;  %v290_v37 = vrot.slane %v1538_v32, %v1509_v14  ;;  %v145_v40 = vcombine.high %v143_v35, %v143_v35  ;;  %v1562_v43 = vrot.slane %v143_v35, %v135_v9 }
  0xd0   :  { %v298_v41 = vrot.slane %v1550_v38, %v1509_v14  ;;  %v1560_v42 = vcombine.high %v1546_v36, %v1546_v36  ;;  %v250_v44 = vrot.slane %v1546_v36, %v1509_v14  ;;  %v1590_v52 = vcombine.high %v1540_v33, %v1540_v33 }
  0xd1   :  { %307 = vrot.lane.b32.xlu0 %v246_v26, %s1432_s0  ;;  %v1570_v46 = vrot.slane %v145_v40, %v135_v9  ;;  %v262_v47 = vrot.slane %v1562_v43, %v1509_v14  ;;  %v1576_v48 = vcombine.high %v1562_v43, %v1562_v43  ;;  %v1605_v56 = vcombine.high %v1550_v38, %v1550_v38 }
  0xd2   :  { %v258_v45 = vrot.slane %v1560_v42, %v1509_v14  ;;  %v302_v57 = vrot.slane %v1590_v52, %v1509_v14  ;;  %v397_v9 = vunpack.c.0.s8 %v396_v5  ;;  %v1302_v5 = vld [vmem:[%s1784_s4 + $0x20] sm:$0xff] }
  0xd3   :  { %311 = vrot.lane.b32.xlu1 %v254_v31, %s1432_s0  ;;  %v266_v49 = vrot.slane %v1570_v46, %v1509_v14  ;;  %v1584_v50 = vcombine.high %v1570_v46, %v1570_v46  ;;  %v270_v51 = vrot.slane %v1576_v48, %v1509_v14  ;;  %v306_v62 = vrot.slane %v1605_v56, %v1509_v14 }
  0xd5   :  { %327 = vrot.lane.b32.xlu0 %v286_v34, %s1432_s0  ;;  %v274_v55 = vrot.slane %v1584_v50, %v1509_v14  ;;  %v400_v14 = vsub.s32 %v397_v9, %v1502_v7 }
  0xd7   :  { %329 = vrot.lane.b32.xlu1 %v290_v37, %s1432_s0 }
  0xd9   :  { %331 = vrot.lane.b32.xlu0 %v294_v39, %s1432_s0 }
  0xdb   :  { %333 = vrot.lane.b32.xlu1 %v298_v41, %s1432_s0 }
  0xdd   :  { %309 = vrot.lane.b32.xlu0 %v250_v44, %s1432_s0 }
  0xdf   :  { %313 = vrot.lane.b32.xlu1 %v258_v45, %s1432_s0 }
  0xe1   :  { %315 = vrot.lane.b32.xlu0 %v262_v47, %s1432_s0 }
  0xe3   :  { %317 = vrot.lane.b32.xlu1 %v266_v49, %s1432_s0 }
  0xe5   :  { %319 = vrot.lane.b32.xlu0 %v270_v51, %s1432_s0 }
  0xe7   :  { %321 = vrot.lane.b32.xlu1 %v274_v55, %s1432_s0 }
  0xe9   :  { %335 = vrot.lane.b32.xlu0 %v302_v57, %s1432_s0 }
  0xeb   :  { %337 = vrot.lane.b32.xlu1 %v306_v62, %s1432_s0 }
  0xed   :  { %478 = vrot.lane.b32.xlu0 %v470_v63, %s1434_s11 }
  0xef   :  { %480 = vrot.lane.b32.xlu1 %v471_v0, %s1434_s11 }
  0xf1   :  { %482 = vrot.lane.b32.xlu0 %v472_v1, %s1434_s11 }
  0xf3   :  { %484 = vrot.lane.b32.xlu1 %v473_v2, %s1434_s11 }
 0x13f   :  { %v324_v3 = vpop.permute.xlu0 %323 }
 0x140   :  { %v364_v13 = vsel %vm355_vm3, %v1511_v17, %v324_v3 }
 0x141   :  { %v326_v6 = vpop.permute.xlu1 %325 }
 0x142   :  { %v365_v11 = vsel %vm355_vm3, %v1517_v22, %v326_v6 }
 0x143   :  { %v308_v8 = vpop.permute.xlu0 %307  ;;  %v427_v15 = vcombine.low %v364_v13, %v365_v11 }
 0x144   :  { %v356_v7 = vsel %vm355_vm3, %v1515_v21, %v308_v8 }
 0x145   :  { %v312_v10 = vpop.permute.xlu1 %311  ;;  %v435_v24 = vrot.slane %v427_v15, %v400_v14  ;;  %v903_v15 = vld [vmem:[%s1786_s7] sm:$0xff] }
 0x147   :  { %v328_v12 = vpop.permute.xlu0 %327 }
 0x148   :  { %v366_v18 = vsel %vm355_vm3, %v1530_v27, %v328_v12  ;;  %v358_v27 = vsel %vm355_vm3, %v1524_v25, %v312_v10 }
 0x149   :  { %v330_v16 = vpop.permute.xlu1 %329 }
 0x14a   :  { %v367_v19 = vsel %vm355_vm3, %v1538_v32, %v330_v16  ;;  %v1717_v16 = vld [vmem:[%s1786_s7 + $0x10] sm:$0xff] }
 0x14b   :  { %v332_v20 = vpop.permute.xlu0 %331  ;;  %v428_v23 = vcombine.low %v366_v18, %v367_v19 }
 0x14c   :  { %v368_v53 = vsel %vm355_vm3, %v1540_v33, %v332_v20 }
 0x14d   :  { %v442_v26 = vrot.slane %v428_v23, %v400_v14  ;;  %v334_v28 = vpop.permute.xlu1 %333 }
 0x14e   :  { %v369_v25 = vsel %vm355_vm3, %v1550_v38, %v334_v28 }
 0x14f   :  { %v310_v22 = vpop.permute.xlu0 %309  ;;  %v443_v29 = vcombine.low %v435_v24, %v442_v26 }
 0x150   :  { %v357_v17 = vsel %vm355_vm3, %v1546_v36, %v310_v22 }
 0x151   :  { %v393_v30 = vcombine.low %v356_v7, %v357_v17  ;;  %v314_v31 = vpop.permute.xlu1 %313  ;;  %468 = vst.msk [vmem:[#allocation2 + $0x19] sm:$0xff] %vm465_vm4, %v443_v29 }
 0x152   :  { %v359_v32 = vsel %vm355_vm3, %v1560_v42, %v314_v31 }
 0x153   :  { %v316_v34 = vpop.permute.xlu0 %315  ;;  %v394_v35 = vcombine.low %v358_v27, %v359_v32  ;;  %v401_v37 = vrot.slane %v393_v30, %v400_v14 }
 0x154   :  { %v360_v44 = vsel %vm355_vm3, %v1562_v43, %v316_v34  ;;  %v444_v43 = vcombine.low %v368_v53, %v369_v25 }
 0x155   :  { %v408_v39 = vrot.slane %v394_v35, %v400_v14  ;;  %v318_v40 = vpop.permute.xlu1 %317 }
 0x156   :  { %v361_v36 = vsel %vm355_vm3, %v1570_v46, %v318_v40  ;;  %v452_v62 = vrot.slane %v444_v43, %v400_v14 }
 0x157   :  { %v320_v41 = vpop.permute.xlu0 %319  ;;  %v409_v21 = vcombine.low %v401_v37, %v408_v39  ;;  %v410_v45 = vcombine.low %v360_v44, %v361_v36 }
 0x158   :  { %v362_v42 = vsel %vm355_vm3, %v1576_v48, %v320_v41 }
 0x159   :  { %v322_v47 = vpop.permute.xlu1 %321  ;;  %466 = vst.msk [vmem:[#allocation2 + $0x1] sm:$0xff] %vm465_vm4, %v409_v21  ;;  %v418_v55 = vrot.slane %v410_v45, %v400_v14 }
 0x15a   :  { %v363_v49 = vsel %vm355_vm3, %v1584_v50, %v322_v47 }
 0x15b   :  { %v336_v51 = vpop.permute.xlu0 %335  ;;  %v411_v46 = vcombine.low %v362_v42, %v363_v49 }
 0x15c   :  { %v370_v59 = vsel %vm355_vm3, %v1590_v52, %v336_v51 }
 0x15d   :  { %v425_v57 = vrot.slane %v411_v46, %v400_v14  ;;  %v338_v58 = vpop.permute.xlu1 %337 }
 0x15e   :  { %v371_v38 = vsel %vm355_vm3, %v1605_v56, %v338_v58 }
 0x15f   :  { %v479_v48 = vpop.permute.xlu0 %478  ;;  %v445_v60 = vcombine.low %v370_v59, %v371_v38  ;;  %v426_v50 = vcombine.low %v418_v55, %v425_v57 }
 0x160   :  { %491 = vst.msk [vmem:[#allocation2 + $0x1] sm:$0xff] %vm490_vm5, %v479_v48 }
 0x161   :  { %v459_v63 = vrot.slane %v445_v60, %v400_v14  ;;  %467 = vst.msk [vmem:[#allocation2 + $0x9] sm:$0xff] %vm465_vm4, %v426_v50  ;;  %v481_v33 = vpop.permute.xlu1 %480  ;;  %v1311_v14 = vld [vmem:[%s1786_s7 + $0x8] sm:$0xff] }
 0x162   :  { %492 = vst.msk [vmem:[#allocation2 + $0x9] sm:$0xff] %vm490_vm5, %v481_v33  ;;  %1398 = vmatprep.subr.mxu0 %v1311_v14 }
 0x163   :  { %v483_v0 = vpop.permute.xlu0 %482  ;;  %v460_v1 = vcombine.low %v452_v62, %v459_v63 }
 0x164   :  { %493 = vst.msk [vmem:[#allocation2 + $0x19] sm:$0xff] %vm490_vm5, %v483_v0 }
 0x165   :  { %469 = vst.msk [vmem:[#allocation2 + $0x21] sm:$0xff] %vm465_vm4, %v460_v1  ;;  %v485_v52 = vpop.permute.xlu1 %484 }
 0x166   :  { %494 = vst.msk [vmem:[#allocation2 + $0x21] sm:$0xff] %vm490_vm5, %v485_v52 }
 0x167   :  { %v501_v56 = vld [vmem:[#allocation2 + $0x1] sm:$0xff] }
 0x168   :  { %v495_v2 = vld [vmem:[#allocation2] sm:$0xff]  ;;  %1372 = vmatprep.mubr.msk.f32.mxu1 %vm508_vm6, %v501_v56 }
 0x169   :  { %1382 = vmatprep.mubr.msk.f32.mxu0 %vm508_vm6, %v495_v2  ;;  %v502_v3 = vld [vmem:[#allocation2 + $0x9] sm:$0xff] }
 0x16a   :  { %v496_v4 = vld [vmem:[#allocation2 + $0x8] sm:$0xff]  ;;  %1373 = vmatmul.mubr.msk.f32.vlgmr.msra.gmra.mxu1 %vm508_vm6, %v502_v3 }
 0x16b   :  { %1383 = vmatmul.mubr.msk.f32.vlgmr.msra.gmra.mxu0 %vm508_vm6, %v496_v4  ;;  %v503_v6 = vld [vmem:[#allocation2 + $0x19] sm:$0xff]  ;;  %1389 = vmatpush3.msk.msra.mxu1 %vm521_vm1, %v1625_v61  ;;  %v710_v11 = vld [vmem:[#allocation2 + $0x2] sm:$0xff]  ;;  %v711_v12 = vld [vmem:[#allocation2 + $0xa] sm:$0xff] }
 0x16c   :  { %v497_v8 = vld [vmem:[#allocation2 + $0x18] sm:$0xff]  ;;  %1375 = vmatprep.mubr.msk.f32.mxu1 %vm508_vm6, %v503_v6  ;;  %1390 = vmatprep.subr.mxu1 %v1302_v5 }
 0x16d   :  { %1385 = vmatprep.mubr.msk.f32.mxu0 %vm508_vm6, %v497_v8  ;;  %v504_v9 = vld [vmem:[#allocation2 + $0x21] sm:$0xff]  ;;  %1391 = vmatpush3.msra.mxu1 %v1302_v5 }
 0x16e   :  { %v498_v10 = vld [vmem:[#allocation2 + $0x20] sm:$0xff]  ;;  %1376 = vmatmul.mubr.msk.f32.gmra.mxu1 %vm508_vm6, %v504_v9  ;;  %1406 = vmatprep.subr.mxu1 %v903_v15 }
 0x16f   :  { %1386 = vmatmul.mubr.msk.f32.gmra.mxu0 %vm508_vm6, %v498_v10  ;;  %1392 = vmatprep.mubr.msk.f32.mxu1 %vm508_vm6, %v710_v11  ;;  %v712_v13 = vld [vmem:[#allocation2 + $0x1a] sm:$0xff]  ;;  %v713_v61 = vld [vmem:[#allocation2 + $0x22] sm:$0xff] }
 0x170   :  { %1399 = vmatpush3.msra.mxu0 %v1311_v14 }
 0x171   :  { %1414 = vmatprep.subr.mxu0 %v1717_v16 }
 0x172   :  { %1393 = vmatmul.mubr.msk.f32.vlgmr.msra.gmra.mxu1 %vm508_vm6, %v711_v12  ;;  %v1309_v12 = vld [vmem:[%s1787_s5] ss:$0 sm:$0xff] }
 0x173   :  { %1395 = vmatprep.mubr.msk.f32.mxu1 %vm508_vm6, %v712_v13  ;;  %1407 = vmatpush3.msra.mxu1 %v903_v15 }
 0x176   :  { %1396 = vmatmul.mubr.msk.f32.gmra.mxu1 %vm508_vm6, %v713_v61 }
 0x22a   :  { %v1374_v18 = vpop.f32.mrf.mxu1 }
 0x22b   :  { %v1384_v19 = vpop.f32.mrf.mxu0 }
 0x22c   :  { %v591_v20 = vpop.f32.mrf.mxu1  ;;  %v697_v17 = vadd.f32 %v1384_v19, %v1374_v18  ;;  %v1310_v18 = vld [vmem:[%s1788_s6] ss:$0 sm:$0xff] }
 0x22d   :  { %v691_v23 = vpop.f32.mrf.mxu0 }
 0x22e   :  { %v1377_v24 = vpop.f32.mrf.mxu1  ;;  %v692_v29 = vadd.f32 %v691_v23, %v591_v20 }
 0x22f   :  { %v1387_v26 = vpop.f32.mrf.mxu0 }
 0x230   :  { %v601_v28 = vpop.f32.mrf.mxu1  ;;  %v707_v32 = vadd.f32 %v1387_v26, %v1377_v24 }
 0x231   :  { %v701_v7 = vpop.f32.mrf.mxu0 }
 0x232   :  { %v1394_v22 = vpop.f32.mrf.mxu1  ;;  %v702_v34 = vadd.f32 %v701_v7, %v601_v28 }
 0x233   :  { %v818_v54 = vadd.f32 %v1394_v22, %v697_v17 }
 0x234   :  { %v798_v30 = vpop.f32.mrf.mxu1 }
 0x235   :  { %v817_v31 = vadd.f32 %v798_v30, %v692_v29  ;;  %v824_v39 = vsel %vm45_vm0, %v818_v54, 0.0 }
 0x236   :  { %v1397_v27 = vpop.f32.mrf.mxu1 }
 0x237   :  { %v823_v35 = vsel %vm45_vm0, %v817_v31, 0.0  ;;  %v820_v40 = vadd.f32 %v1397_v27, %v707_v32 }
 0x238   :  { %v808_v37 = vpop.f32.mrf.mxu1  ;;  %v825_v41 = vadd.f32 %v824_v39, %v823_v35 }
 0x239   :  { %v819_v36 = vadd.f32 %v808_v37, %v702_v34  ;;  %v828_v45 = vsel %vm45_vm0, %v820_v40, 0.0 }
 0x23b   :  { %v826_v21 = vsel %vm45_vm0, %v819_v36, 0.0 }
 0x23c   :  { %v827_v44 = vadd.f32 %v826_v21, %v825_v41 }
 0x23e   :  { %v829_v47 = vadd.f32 %v828_v45, %v827_v44 }
 0x240   :  { %v830_v25 = vrot.slane %v829_v47, 4 }
 0x242   :  { %v831_v42 = vadd.f32 %v830_v25, %v829_v47 }
 0x244   :  { %v832_v49 = vrot.slane %v831_v42, 2 }
 0x246   :  { %v833_v51 = vadd.f32 %v832_v49, %v831_v42 }
 0x248   :  { %v834_v46 = vrot.slane %v833_v51, 1 }
 0x24a   :  { %v835_v53 = vadd.f32 %v834_v46, %v833_v51 }
 0x24c   :  { %v837_v43 = vmul.f32 0.03125, %v835_v53 }
 0x24e   :  { %v838_v55 = vsub.f32 %v817_v31, %v837_v43  ;;  %v839_v57 = vsub.f32 %v818_v54, %v837_v43  ;;  %v840_v58 = vsub.f32 %v819_v36, %v837_v43  ;;  %v841_v59 = vsub.f32 %v820_v40, %v837_v43 }
 0x250   :  { %v842_v38 = vmul.f32 %v838_v55, %v838_v55  ;;  %v843_v48 = vmul.f32 %v839_v57, %v839_v57  ;;  %v844_v60 = vmul.f32 %v840_v58, %v840_v58  ;;  %v845_v50 = vmul.f32 %v841_v59, %v841_v59 }
 0x252   :  { %v846_v62 = vsel %vm45_vm0, %v842_v38, 0.0  ;;  %v847_v63 = vsel %vm45_vm0, %v843_v48, 0.0  ;;  %v849_v0 = vsel %vm45_vm0, %v844_v60, 0.0  ;;  %v851_v52 = vsel %vm45_vm0, %v845_v50, 0.0 }
 0x253   :  { %v848_v33 = vadd.f32 %v847_v63, %v846_v62 }
 0x255   :  { %v850_v1 = vadd.f32 %v849_v0, %v848_v33 }
 0x257   :  { %v852_v56 = vadd.f32 %v851_v52, %v850_v1 }
 0x259   :  { %v853_v2 = vrot.slane %v852_v56, 4 }
 0x25b   :  { %v854_v3 = vadd.f32 %v853_v2, %v852_v56 }
 0x25d   :  { %v855_v4 = vrot.slane %v854_v3, 2 }
 0x25f   :  { %v856_v5 = vadd.f32 %v855_v4, %v854_v3 }
 0x261   :  { %v857_v6 = vrot.slane %v856_v5, 1 }
 0x263   :  { %v858_v8 = vadd.f32 %v857_v6, %v856_v5 }
 0x265   :  { %v859_v9 = vmul.f32 0.03125, %v858_v8 }
 0x267   :  { %v860_v10 = vadd.f32 1e-05, %v859_v9 }
 0x269   :  { %1427 = vrsqrt.f32 %v860_v10 }
 0x276   :  { %v1428_v11 = vpop.eup %1427 }
 0x277   :  { %v862_v13 = vmul.f32 %v1428_v11, %v838_v55  ;;  %v863_v61 = vmul.f32 %v1428_v11, %v839_v57  ;;  %v864_v14 = vmul.f32 %v1428_v11, %v840_v58  ;;  %v865_v15 = vmul.f32 %v1428_v11, %v841_v59 }
 0x279   :  { %v872_v19 = vmul.f32 %v1309_v12, %v862_v13  ;;  %v873_v20 = vmul.f32 %v1309_v12, %v863_v61  ;;  %v874_v23 = vmul.f32 %v1309_v12, %v864_v14  ;;  %v875_v24 = vmul.f32 %v1309_v12, %v865_v15 }
 0x27b   :  { %v882_v26 = vadd.f32 %v1310_v18, %v872_v19  ;;  %v883_v28 = vadd.f32 %v1310_v18, %v873_v20  ;;  %v884_v22 = vadd.f32 %v1310_v18, %v874_v23  ;;  %v885_v17 = vadd.f32 %v1310_v18, %v875_v24 }
 0x27d   :  { %v886_v29 = vmax.f32 %v882_v26, 0.0  ;;  %v887_v7 = vmax.f32 %v883_v28, 0.0  ;;  %v888_v30 = vmax.f32 %v884_v22, 0.0  ;;  %v889_v54 = vmax.f32 %v885_v17, 0.0 }
 0x27f   :  { %895 = vst.msk [vmem:[#allocation3 + $0x1] sm:$0xff] %vm45_vm0, %v886_v29  ;;  %896 = vst.msk [vmem:[#allocation3 + $0x9] sm:$0xff] %vm45_vm0, %v887_v7 }
 0x280   :  { %897 = vst.msk [vmem:[#allocation3 + $0x19] sm:$0xff] %vm45_vm0, %v888_v30  ;;  %898 = vst.msk [vmem:[#allocation3 + $0x21] sm:$0xff] %vm45_vm0, %v889_v54 }
 0x286   :  { %v904_v31 = vld [vmem:[#allocation3 + $0x1] sm:$0xff]  ;;  %v905_v32 = vld [vmem:[#allocation3 + $0x9] sm:$0xff] }
 0x287   :  { %v899_v27 = vld [vmem:[#allocation3] sm:$0xff]  ;;  %1400 = vmatprep.mubr.msk.f32.mxu0 %vm45_vm0, %v904_v31  ;;  %v900_v34 = vld [vmem:[#allocation3 + $0x8] sm:$0xff]  ;;  %v901_v37 = vld [vmem:[#allocation3 + $0x18] sm:$0xff] }
 0x288   :  { %1408 = vmatprep.mubr.msk.f32.mxu1 %vm45_vm0, %v899_v27  ;;  %1401 = vmatmul.mubr.msk.f32.vlgmr.msra.gmra.mxu0 %vm45_vm0, %v905_v32  ;;  %v906_v35 = vld [vmem:[#allocation3 + $0x19] sm:$0xff]  ;;  %v907_v39 = vld [vmem:[#allocation3 + $0x21] sm:$0xff]  ;;  %v1105_v41 = vld [vmem:[#allocation3 + $0xa] sm:$0xff] }
 0x289   :  { %1409 = vmatmul.mubr.msk.f32.vlgmr.msra.gmra.mxu1 %vm45_vm0, %v900_v34  ;;  %1415 = vmatpush3.msra.mxu0 %v1717_v16  ;;  %v902_v40 = vld [vmem:[#allocation3 + $0x20] sm:$0xff] }
 0x28a   :  { %1403 = vmatprep.mubr.msk.f32.mxu0 %vm45_vm0, %v906_v35  ;;  %1411 = vmatprep.mubr.msk.f32.mxu1 %vm45_vm0, %v901_v37  ;;  %v1104_v36 = vld [vmem:[#allocation3 + $0x2] sm:$0xff]  ;;  %v1106_v21 = vld [vmem:[#allocation3 + $0x1a] sm:$0xff] }
 0x28b   :  { %v1107_v16 = vld [vmem:[#allocation3 + $0x22] sm:$0xff] }
 0x28c   :  { %1404 = vmatmul.mubr.msk.f32.gmra.mxu0 %vm45_vm0, %v907_v39  ;;  %v1325_v39 = vld [vmem:[%s1789_s8] ss:$0 sm:$0xff] }
 0x28d   :  { %1412 = vmatmul.mubr.msk.f32.gmra.mxu1 %vm45_vm0, %v902_v40  ;;  %1416 = vmatprep.mubr.msk.f32.mxu0 %vm45_vm0, %v1104_v36 }
 0x290   :  { %1417 = vmatmul.mubr.msk.f32.vlgmr.msra.gmra.mxu0 %vm45_vm0, %v1105_v41 }
 0x291   :  { %1419 = vmatprep.mubr.msk.f32.mxu0 %vm45_vm0, %v1106_v21 }
 0x294   :  { %1420 = vmatmul.mubr.msk.f32.gmra.mxu0 %vm45_vm0, %v1107_v16  ;;  %v1326_v16 = vld [vmem:[%s1790_s9] ss:$0 sm:$0xff] }
 0x348   :  { %v1402_v44 = vpop.f32.mrf.mxu0 }
 0x349   :  { %v1410_v45 = vpop.f32.mrf.mxu1 }
 0x34a   :  { %v988_v47 = vpop.f32.mrf.mxu0  ;;  %v1091_v53 = vadd.f32 %v1410_v45, %v1402_v44 }
 0x34b   :  { %v1085_v25 = vpop.f32.mrf.mxu1 }
 0x34c   :  { %v1405_v42 = vpop.f32.mrf.mxu0  ;;  %v1086_v43 = vadd.f32 %v1085_v25, %v988_v47 }
 0x34d   :  { %v1413_v49 = vpop.f32.mrf.mxu1 }
 0x34e   :  { %v998_v51 = vpop.f32.mrf.mxu0  ;;  %v1101_v48 = vadd.f32 %v1413_v49, %v1405_v42 }
 0x34f   :  { %v1095_v55 = vpop.f32.mrf.mxu1 }
 0x350   :  { %v1418_v46 = vpop.f32.mrf.mxu0  ;;  %v1096_v60 = vadd.f32 %v1095_v55, %v998_v51 }
 0x351   :  { %v1208_v58 = vadd.f32 %v1418_v46, %v1091_v53 }
 0x352   :  { %v1188_v57 = vpop.f32.mrf.mxu0 }
 0x353   :  { %v1207_v59 = vadd.f32 %v1188_v57, %v1086_v43  ;;  %v1214_v63 = vsel %vm45_vm0, %v1208_v58, 0.0 }
 0x354   :  { %v1421_v38 = vpop.f32.mrf.mxu0 }
 0x355   :  { %v1213_v50 = vsel %vm45_vm0, %v1207_v59, 0.0  ;;  %v1210_v33 = vadd.f32 %v1421_v38, %v1101_v48 }
 0x356   :  { %v1198_v62 = vpop.f32.mrf.mxu0  ;;  %v1215_v1 = vadd.f32 %v1214_v63, %v1213_v50 }
 0x357   :  { %v1209_v0 = vadd.f32 %v1198_v62, %v1096_v60  ;;  %v1218_v2 = vsel %vm45_vm0, %v1210_v33, 0.0 }
 0x359   :  { %v1216_v52 = vsel %vm45_vm0, %v1209_v0, 0.0 }
 0x35a   :  { %v1217_v56 = vadd.f32 %v1216_v52, %v1215_v1 }
 0x35c   :  { %v1219_v3 = vadd.f32 %v1218_v2, %v1217_v56 }
 0x35e   :  { %v1220_v4 = vrot.slane %v1219_v3, 4 }
 0x360   :  { %v1221_v5 = vadd.f32 %v1220_v4, %v1219_v3 }
 0x362   :  { %v1222_v6 = vrot.slane %v1221_v5, 2 }
 0x364   :  { %v1223_v8 = vadd.f32 %v1222_v6, %v1221_v5 }
 0x366   :  { %v1224_v9 = vrot.slane %v1223_v8, 1 }
 0x368   :  { %v1225_v10 = vadd.f32 %v1224_v9, %v1223_v8 }
 0x36a   :  { %v1226_v11 = vmul.f32 0.03125, %v1225_v10 }
 0x36c   :  { %v1227_v12 = vsub.f32 %v1207_v59, %v1226_v11  ;;  %v1228_v13 = vsub.f32 %v1208_v58, %v1226_v11  ;;  %v1229_v61 = vsub.f32 %v1209_v0, %v1226_v11  ;;  %v1230_v14 = vsub.f32 %v1210_v33, %v1226_v11 }
 0x36e   :  { %v1231_v15 = vmul.f32 %v1227_v12, %v1227_v12  ;;  %v1232_v18 = vmul.f32 %v1228_v13, %v1228_v13  ;;  %v1233_v19 = vmul.f32 %v1229_v61, %v1229_v61  ;;  %v1234_v20 = vmul.f32 %v1230_v14, %v1230_v14 }
 0x370   :  { %v1235_v23 = vsel %vm45_vm0, %v1231_v15, 0.0  ;;  %v1236_v24 = vsel %vm45_vm0, %v1232_v18, 0.0  ;;  %v1238_v28 = vsel %vm45_vm0, %v1233_v19, 0.0  ;;  %v1240_v17 = vsel %vm45_vm0, %v1234_v20, 0.0 }
 0x371   :  { %v1237_v26 = vadd.f32 %v1236_v24, %v1235_v23 }
 0x373   :  { %v1239_v22 = vadd.f32 %v1238_v28, %v1237_v26 }
 0x375   :  { %v1241_v29 = vadd.f32 %v1240_v17, %v1239_v22 }
 0x377   :  { %v1242_v7 = vrot.slane %v1241_v29, 4 }
 0x379   :  { %v1243_v30 = vadd.f32 %v1242_v7, %v1241_v29 }
 0x37b   :  { %v1244_v54 = vrot.slane %v1243_v30, 2 }
 0x37d   :  { %v1245_v31 = vadd.f32 %v1244_v54, %v1243_v30 }
 0x37f   :  { %v1246_v27 = vrot.slane %v1245_v31, 1 }
 0x381   :  { %v1247_v32 = vadd.f32 %v1246_v27, %v1245_v31 }
 0x383   :  { %v1248_v34 = vmul.f32 0.03125, %v1247_v32 }
 0x385   :  { %v1249_v35 = vadd.f32 1e-05, %v1248_v34 }
 0x387   :  { %1429 = vrsqrt.f32 %v1249_v35 }
 0x394   :  { %v1430_v37 = vpop.eup %1429 }
 0x395   :  { %v1251_v40 = vmul.f32 %v1430_v37, %v1227_v12  ;;  %v1252_v36 = vmul.f32 %v1430_v37, %v1228_v13  ;;  %v1253_v41 = vmul.f32 %v1430_v37, %v1229_v61  ;;  %v1254_v21 = vmul.f32 %v1430_v37, %v1230_v14 }
 0x397   :  { %v1261_v44 = vmul.f32 %v1325_v39, %v1251_v40  ;;  %v1262_v45 = vmul.f32 %v1325_v39, %v1252_v36  ;;  %v1263_v47 = vmul.f32 %v1325_v39, %v1253_v41  ;;  %v1264_v25 = vmul.f32 %v1325_v39, %v1254_v21 }
 0x399   :  { %v1271_v42 = vadd.f32 %v1326_v16, %v1261_v44  ;;  %v1272_v49 = vadd.f32 %v1326_v16, %v1262_v45  ;;  %v1273_v51 = vadd.f32 %v1326_v16, %v1263_v47  ;;  %v1274_v46 = vadd.f32 %v1326_v16, %v1264_v25 }
 0x39b   :  { %v1275_v53 = vmax.f32 %v1271_v42, 0.0  ;;  %v1276_v43 = vmax.f32 %v1272_v49, 0.0  ;;  %v1277_v55 = vmax.f32 %v1273_v51, 0.0  ;;  %v1278_v57 = vmax.f32 %v1274_v46, 0.0 }
 0x39d   :  { %1279 = vst.msk [vmem:[%s1791_s10] sm:$0xff] %vm45_vm0, %v1275_v53  ;;  %1280 = vst.msk [vmem:[%s1791_s10 + $0x8] sm:$0xff] %vm45_vm0, %v1276_v43 }
 0x39e   :  { %1281 = vst.msk [vmem:[%s1791_s10 + $0x10] sm:$0xff] %vm45_vm0, %v1277_v55  ;;  %1282 = vst.msk [vmem:[%s1791_s10 + $0x18] sm:$0xff] %vm45_vm0, %v1278_v57 }

</bundles_post_ra>
